<compile_context>
chip_gen: v5e
topology: v5e:2x2
jax: 0.10.0
libtpu: 0.0.40
codegen_flags: <defaults>
</compile_context>

<pallas_src>
import jax
import jax.numpy as jnp
from jax.experimental import pallas as pl
from jax.experimental.pallas import tpu as pltpu

PACK = 8          # batch rows packed per 128-lane row (8 * 16 features = 128 lanes)
IN_F = 16
HID = 8
OUT_F = 1
NEG_SLOPE = 0.01  # PyTorch nn.LeakyReLU() default


def _mlp_kernel(x_ref, w1_ref, b1_ref, w2_ref, b2_ref, o_ref):
    # Hot path: two lane-dense matmuls (MXU) + LeakyReLU (VPU), all in VMEM.
    x = x_ref[...]                                                   # (TR, 128)
    h = jnp.dot(x, w1_ref[...], preferred_element_type=jnp.float32)  # (TR, 64)
    h = h + b1_ref[...]                                              # broadcast (1, 64)
    h = jnp.where(h > 0, h, NEG_SLOPE * h)                           # LeakyReLU
    y = jnp.dot(h, w2_ref[...], preferred_element_type=jnp.float32)  # (TR, 8)
    y = y + b2_ref[...]                                              # broadcast (1, 8)
    o_ref[...] = y.astype(o_ref.dtype)


def junk_machine_forward(x, w1, b1, w2, b2, *, tile_rows=512):
    """x: (B, 16) -> (B, 1). tile_rows is packed rows per grid step (= 8*tile_rows batch rows)."""
    B = x.shape[0]
    dtype = x.dtype

    # --- batch-pack: 8 batch rows per 128-lane VMEM row -----------------------
    R = pl.cdiv(B, PACK)                      # packed rows needed
    TR = min(tile_rows, R)                    # packed rows per grid step
    Rp = pl.cdiv(R, TR) * TR                  # pad to a tile multiple
    Bp = Rp * PACK
    if Bp != B:
        x = jnp.pad(x, ((0, Bp - B), (0, 0)))
    xp = x.reshape(Rp, PACK * IN_F)           # (Rp, 128) — free contiguous reshape

    # Block-diagonal packed weights: one copy of w1/w2 per packed batch element.
    eye = jnp.eye(PACK, dtype=w1.dtype)
    w1p = jnp.kron(eye, w1)                                   # (128, 64)
    w2p = jnp.kron(eye.astype(w2.dtype), w2)                  # (64, 8)
    b1p = jnp.tile(b1.reshape(1, HID), (1, PACK))             # (1, 64)
    b2p = jnp.tile(b2.reshape(1, OUT_F), (1, PACK))           # (1, 8)

    grid = (Rp // TR,)
    yp = pl.pallas_call(
        _mlp_kernel,
        out_shape=jax.ShapeDtypeStruct((Rp, PACK * OUT_F), dtype),
        grid=grid,
        in_specs=[
            pl.BlockSpec((TR, PACK * IN_F), lambda i: (i, 0)),          # x tile
            pl.BlockSpec((PACK * IN_F, PACK * HID), lambda i: (0, 0)),  # w1 (resident)
            pl.BlockSpec((1, PACK * HID), lambda i: (0, 0)),            # b1 (resident)
            pl.BlockSpec((PACK * HID, PACK * OUT_F), lambda i: (0, 0)), # w2 (resident)
            pl.BlockSpec((1, PACK * OUT_F), lambda i: (0, 0)),          # b2 (resident)
        ],
        out_specs=pl.BlockSpec((TR, PACK * OUT_F), lambda i: (i, 0)),
        compiler_params=pltpu.CompilerParams(
            dimension_semantics=("parallel",)),                         # megacore-friendly
    )(xp, w1p, b1p, w2p, b2p)

    # (Rp, 8) -> (Bp, 1) is the same contiguous bytes (free); drop the batch padding.
    return yp.reshape(Bp, OUT_F)[:B]


def init_params(key):
    # Deterministic init mimicking PyTorch's default Linear init:
    # U(-1/sqrt(fan_in), 1/sqrt(fan_in)) for both weight and bias.
    k1, k2, k3, k4 = jax.random.split(key, 4)
    bound1 = 1.0 / jnp.sqrt(16.0)
    w1 = jax.random.uniform(k1, (IN_F, HID), jnp.float32, -bound1, bound1)
    b1 = jax.random.uniform(k2, (1, HID), jnp.float32, -bound1, bound1)
    bound2 = 1.0 / jnp.sqrt(8.0)
    w2 = jax.random.uniform(k3, (HID, OUT_F), jnp.float32, -bound2, bound2)
    b2 = jax.random.uniform(k4, (1, OUT_F), jnp.float32, -bound2, bound2)
    return w1, b1, w2, b2


def reference_forward(x, w1, b1, w2, b2):
    h = x @ w1 + b1
    h = jnp.where(h > 0, h, NEG_SLOPE * h)
    return h @ w2 + b2


if __name__ == "__main__":
    key = jax.random.PRNGKey(0)
    kx, kp, kx2 = jax.random.split(key, 3)
    w1, b1, w2, b2 = init_params(kp)

    # Small case (B=2): single grid point, exercises batch padding to a multiple of 8.
    B = 2
    x = jax.random.normal(kx, (B, IN_F), dtype=jnp.float32)
    out = jax.block_until_ready(junk_machine_forward(x, w1, b1, w2, b2))
    ref = reference_forward(x, w1, b1, w2, b2)
    assert out.shape == (B, 1)
    assert jnp.allclose(out, ref, atol=1e-5, rtol=1e-5)

    # Slightly larger case: exercises the tiled grid (>1 step) and tail padding.
    B2 = 300
    x2 = jax.random.normal(kx2, (B2, IN_F), dtype=jnp.float32)
    out2 = jax.block_until_ready(
        junk_machine_forward(x2, w1, b1, w2, b2, tile_rows=16))
    ref2 = reference_forward(x2, w1, b1, w2, b2)
    assert out2.shape == (B2, 1)
    assert jnp.allclose(out2, ref2, atol=1e-5, rtol=1e-5)

    print("KERNEL_OK")
</pallas_src>

<mosaic_0001>
module attributes {stable_mosaic.version = 11 : i64} {
  func.func @_mlp_kernel(%arg0: i32, %arg1: memref<1x128xf32, #tpu.memory_space<vmem>>, %arg2: memref<128x64xf32, #tpu.memory_space<vmem>>, %arg3: memref<1x64xf32, #tpu.memory_space<vmem>>, %arg4: memref<64x8xf32, #tpu.memory_space<vmem>>, %arg5: memref<1x8xf32, #tpu.memory_space<vmem>>, %arg6: memref<1x8xf32, #tpu.memory_space<vmem>>) attributes {dimension_semantics = [#tpu.dimension_semantics<parallel>], iteration_bounds = array<i64: 1>, scalar_prefetch = 0 : i64, scratch_operands = 0 : i64, tpu.core_type = #tpu.core_type<tc>, window_params = [{transform_indices = @transform_0, window_bounds = array<i64: 1, 128>}, {pipeline_mode = #tpu.pipeline_mode<synchronous>, transform_indices = @transform_1, window_bounds = array<i64: 128, 64>}, {pipeline_mode = #tpu.pipeline_mode<synchronous>, transform_indices = @transform_2, window_bounds = array<i64: 1, 64>}, {pipeline_mode = #tpu.pipeline_mode<synchronous>, transform_indices = @transform_3, window_bounds = array<i64: 64, 8>}, {pipeline_mode = #tpu.pipeline_mode<synchronous>, transform_indices = @transform_4, window_bounds = array<i64: 1, 8>}, {transform_indices = @transform_5, window_bounds = array<i64: 1, 8>}]} {
    %c0 = arith.constant 0 : index
    %c0_0 = arith.constant 0 : index
    %0 = vector.load %arg1[%c0, %c0_0] : memref<1x128xf32, #tpu.memory_space<vmem>>, vector<1x128xf32>
    %c0_1 = arith.constant 0 : index
    %c0_2 = arith.constant 0 : index
    %1 = vector.load %arg2[%c0_1, %c0_2] : memref<128x64xf32, #tpu.memory_space<vmem>>, vector<128x64xf32>
    %cst = arith.constant dense<0.000000e+00> : vector<1x64xf32>
    %2 = tpu.matmul %0, %1, %cst {dimension_numbers = #tpu.dot_dimension_numbers<[1], [0], [0], [1], [0, 0, 1, 1], [], []>} : vector<1x128xf32>, vector<128x64xf32>, vector<1x64xf32> -> vector<1x64xf32>
    %c0_3 = arith.constant 0 : index
    %c0_4 = arith.constant 0 : index
    %3 = vector.load %arg3[%c0_3, %c0_4] : memref<1x64xf32, #tpu.memory_space<vmem>>, vector<1x64xf32>
    %4 = arith.addf %2, %3 : vector<1x64xf32>
    %cst_5 = arith.constant 0.000000e+00 : f32
    %5 = vector.broadcast %cst_5 : f32 to vector<1x64xf32>
    %6 = arith.cmpf ogt, %4, %5 : vector<1x64xf32>
    %cst_6 = arith.constant 0.00999999977 : f32
    %7 = vector.broadcast %cst_6 : f32 to vector<1x64xf32>
    %8 = arith.mulf %7, %4 : vector<1x64xf32>
    %9 = arith.select %6, %4, %8 : vector<1x64xi1>, vector<1x64xf32>
    %c0_7 = arith.constant 0 : index
    %c0_8 = arith.constant 0 : index
    %10 = vector.load %arg4[%c0_7, %c0_8] : memref<64x8xf32, #tpu.memory_space<vmem>>, vector<64x8xf32>
    %cst_9 = arith.constant dense<0.000000e+00> : vector<1x8xf32>
    %11 = tpu.matmul %9, %10, %cst_9 {dimension_numbers = #tpu.dot_dimension_numbers<[1], [0], [0], [1], [0, 0, 1, 1], [], []>} : vector<1x64xf32>, vector<64x8xf32>, vector<1x8xf32> -> vector<1x8xf32>
    %c0_10 = arith.constant 0 : index
    %c0_11 = arith.constant 0 : index
    %12 = vector.load %arg5[%c0_10, %c0_11] : memref<1x8xf32, #tpu.memory_space<vmem>>, vector<1x8xf32>
    %13 = arith.addf %11, %12 : vector<1x8xf32>
    %c0_12 = arith.constant 0 : index
    %c0_13 = arith.constant 0 : index
    %14 = vector.load %arg6[%c0_12, %c0_13] : memref<1x8xf32, #tpu.memory_space<vmem>>, vector<1x8xf32>
    tpu.vector_store %arg6[%c0_12, %c0_13], %13 {strides = array<i32>} : memref<1x8xf32, #tpu.memory_space<vmem>>, vector<1x8xf32>,
    return
  }
  func.func @transform_0(%arg0: i32) -> (i32, i32) {
    %c0_i32 = arith.constant 0 : i32
    %c0_i32_0 = arith.constant 0 : i32
    return %arg0, %c0_i32 : i32, i32
  }
  func.func @transform_1(%arg0: i32) -> (i32, i32) {
    %c0_i32 = arith.constant 0 : i32
    %c0_i32_0 = arith.constant 0 : i32
    %c0_i32_1 = arith.constant 0 : i32
    return %c0_i32, %c0_i32_0 : i32, i32
  }
  func.func @transform_2(%arg0: i32) -> (i32, i32) {
    %c0_i32 = arith.constant 0 : i32
    %c0_i32_0 = arith.constant 0 : i32
    %c0_i32_1 = arith.constant 0 : i32
    return %c0_i32, %c0_i32_0 : i32, i32
  }
  func.func @transform_3(%arg0: i32) -> (i32, i32) {
    %c0_i32 = arith.constant 0 : i32
    %c0_i32_0 = arith.constant 0 : i32
    %c0_i32_1 = arith.constant 0 : i32
    return %c0_i32, %c0_i32_0 : i32, i32
  }
  func.func @transform_4(%arg0: i32) -> (i32, i32) {
    %c0_i32 = arith.constant 0 : i32
    %c0_i32_0 = arith.constant 0 : i32
    %c0_i32_1 = arith.constant 0 : i32
    return %c0_i32, %c0_i32_0 : i32, i32
  }
  func.func @transform_5(%arg0: i32) -> (i32, i32) {
    %c0_i32 = arith.constant 0 : i32
    %c0_i32_0 = arith.constant 0 : i32
    return %arg0, %c0_i32 : i32, i32
  }
}

</mosaic_0001>

<bundles_post_ra>
// kernel: tpu_custom_call.1
= control target key start
LH: loop header
LB: loop body
LE: loop exit
PB: predicated region body
PF: predicated region fallthrough
CT: control target
= control target key end

     0   :  { %s256_s0 = inlined_call_operand.vmem [shape: f32[1,128], index: 0, kind: input, shape index: {}]   ;;  %s257_s1 = inlined_call_operand.vmem [shape: f32[128,64], index: 1, kind: input, shape index: {}]   ;;  %s258_s2 = inlined_call_operand.vmem [shape: f32[1,64], index: 2, kind: input, shape index: {}]   ;;  %s259_s3 = inlined_call_operand.vmem [shape: f32[64,8], index: 3, kind: input, shape index: {}]   ;;  %s260_s4 = inlined_call_operand.vmem [shape: f32[1,8], index: 4, kind: input, shape index: {}]   ;;  %s261_s5 = inlined_call_operand.hbm [shape: f32[1,8], index: 5, kind: output, shape index: {}]  }
   0x1   :  { %v37_v0 = vld [vmem:[%s257_s1 + $0x78] sm:$0xff]  ;;  %v36_v1 = vld [vmem:[%s257_s1 + $0x70] sm:$0xff]  ;;  %v35_v2 = vld [vmem:[%s257_s1 + $0x68] sm:$0xff] }
   0x2   :  { %39 = vmatpush.msra.mxu0 %v37_v0  ;;  %v34_v3 = vld [vmem:[%s257_s1 + $0x60] sm:$0xff]  ;;  %v69_v4 = vld [vmem:[%s259_s3 + $0x38] sm:$0xff]  ;;  %v68_v6 = vld [vmem:[%s259_s3 + $0x30] sm:$0xff] }
   0x3   :  { %v33_v5 = vld [vmem:[%s257_s1 + $0x58] sm:$0xff]  ;;  %83 = vmatpush.msra.mxu1 %v69_v4  ;;  %v67_v7 = vld [vmem:[%s259_s3 + $0x28] sm:$0xff] }
   0x4   :  { %40 = vmatpush.msra.mxu0 %v36_v1 }
   0x6   :  { %41 = vmatpush.msra.mxu0 %v35_v2 }
   0x8   :  { %42 = vmatpush.msra.mxu0 %v34_v3 }
   0x9   :  { %10 = vsyncpa [#allocation3], 0  ;;  %v32_v8 = vld [vmem:[%s257_s1 + $0x50] sm:$0xff]  ;;  %84 = vmatpush.msra.mxu1 %v68_v6  ;;  %v66_v9 = vld [vmem:[%s259_s3 + $0x20] sm:$0xff]  ;;  %vm71_vm1 = vcmask 523264   ;;  %s141_s20 = smov [#allocation2]  }
   0xa   :  { %43 = vmatpush.msra.mxu0 %v33_v5  ;;  %v31_v10 = vld [vmem:[%s257_s1 + $0x48] sm:$0xff]  ;;  %v65_v11 = vld [vmem:[%s259_s3 + $0x18] sm:$0xff]  ;;  %v30_v12 = vld [vmem:[%s257_s1 + $0x40] sm:$0xff]  ;;  %s102_s21 = sshll.u32 %s141_s20, 4  ;;  %s104_s23 = sshll.u32 %s261_s5, 4  ;;  %vm95_vm2 = vcmask 57344   ;;  %s103_s21 = int_to_ptr.vmem [resolvable:$true] %s102_s21  ;;  %s105_s23 = int_to_ptr.hbm [resolvable:$true] %s104_s23 }
   0xb   :  { %85 = vmatpush.msra.mxu1 %v67_v7  ;;  %v29_v13 = vld [vmem:[%s257_s1 + $0x38] sm:$0xff]  ;;  %v28_v14 = vld [vmem:[%s257_s1 + $0x30] sm:$0xff]  ;;  %v27_v15 = vld [vmem:[%s257_s1 + $0x28] sm:$0xff] }
   0xc   :  { %44 = vmatpush.msra.mxu0 %v32_v8  ;;  %v26_v16 = vld [vmem:[%s257_s1 + $0x20] sm:$0xff]  ;;  %v25_v17 = vld [vmem:[%s257_s1 + $0x18] sm:$0xff]  ;;  %v24_v18 = vld [vmem:[%s257_s1 + $0x10] sm:$0xff] }
   0xd   :  { %86 = vmatpush.msra.mxu1 %v66_v9  ;;  %v23_v19 = vld [vmem:[%s257_s1 + $0x8] sm:$0xff]  ;;  %v22_v20 = vld [vmem:[%s257_s1] sm:$0xff]  ;;  %v64_v22 = vld [vmem:[%s259_s3 + $0x10] sm:$0xff] }
   0xe   :  { %45 = vmatpush.msra.mxu0 %v31_v10  ;;  %v21_v21 = vld [vmem:[%s256_s0] sm:$0x1]  ;;  %v63_v23 = vld [vmem:[%s259_s3 + $0x8] sm:$0xff] }
   0xf   :  { %87 = vmatpush.msra.mxu1 %v65_v11  ;;  %v62_v24 = vld [vmem:[%s259_s3] sm:$0xff] }
  0x10   :  { %46 = vmatpush.msra.mxu0 %v30_v12  ;;  %v38_v25 = vld [vmem:[%s258_s2] sm:$0x1] }
  0x11   :  { %88 = vmatpush.msra.mxu1 %v64_v22  ;;  %v70_v30 = vld [vmem:[%s260_s4] sm:$0x1] }
  0x12   :  { %47 = vmatpush.msra.mxu0 %v29_v13 }
  0x13   :  { %89 = vmatpush.msra.mxu1 %v63_v23 }
  0x14   :  { %48 = vmatpush.msra.mxu0 %v28_v14 }
  0x15   :  { %90 = vmatpush.msra.mxu1 %v62_v24 }
  0x16   :  { %49 = vmatpush.msra.mxu0 %v27_v15 }
  0x18   :  { %50 = vmatpush.msra.mxu0 %v26_v16 }
  0x1a   :  { %51 = vmatpush.msra.mxu0 %v25_v17 }
  0x1c   :  { %52 = vmatpush.msra.mxu0 %v24_v18 }
  0x1e   :  { %53 = vmatpush.msra.mxu0 %v23_v19 }
  0x20   :  { %54 = vmatpush.msra.mxu0 %v22_v20 }
  0x21   :  { %55 = vmatmul.f32.vlgmr.msra.gmra.mxu0 %v21_v21 }
  0x9e   :  { %v56_v26 = vpop.f32.mrf.mxu0 }
  0x9f   :  { %v57_v27 = vadd.f32 %v56_v26, %v38_v25 }
  0xa1   :  { %v60_v28 = vmul.f32 0.01, %v57_v27  ;;  %vm59_vm0 = vcmp.gt.f32.partialorder %v57_v27, 0.0 }
  0xa3   :  { %v61_v29 = vsel %vm59_vm0, %v57_v27, %v60_v28 }
  0xa4   :  { %113 = vmatmul.msk.f32.vlgmr.msra.gmra.mxu1 %vm71_vm1, %v61_v29 }
 0x121   :  { %v92_v31 = vpop.f32.mrf.mxu1 }
 0x122   :  { %v93_v32 = vadd.f32 %v92_v31, %v70_v30 }
 0x124   :  { %96 = vst.msk [vmem:[#allocation2] sm:$0x1] %vm95_vm2, %v93_v32 }
 0x125   :  { %107 = dma.vmem_to_hbm [thread:$0]  %s103_s21, 16, %s105_s23, [#allocation3]  }
 0x126   :  { %139 = dma.done.wait [#allocation3], 16  }
 0x127   :  { %140 = vsyncadd [#allocation3], 4294967280 }
 0x128   :  { %112 = vsyncpa [#allocation3], 1 }

</bundles_post_ra>
